<compile_context>
chip_gen: v7x
topology: tpu7x:2x2x1
jax: 0.10.0
libtpu: 0.0.40
codegen_flags: <defaults>
</compile_context>

<pallas_src>
import jax
import jax.numpy as jnp
from jax import lax
from jax.experimental import pallas as pl
from jax.experimental.pallas import tpu as pltpu

_ROWS = 32   # logit rows (matches torch.rand(32, 2))
_COLS = 2    # logit cols


def _uniform_kernel(seed_ref, out_ref):
    """Fill out_ref (VMEM, f32[32,2]) with uniform[0,1) from a counter hash."""
    # Per-element counter (one 32-bit lane per output element).
    row = lax.broadcasted_iota(jnp.int32, (_ROWS, _COLS), 0)
    col = lax.broadcasted_iota(jnp.int32, (_ROWS, _COLS), 1)
    ctr = (row * _COLS + col).astype(jnp.uint32)

    # Mix in the seed (golden-ratio offset per seed).
    seed = seed_ref[0].astype(jnp.uint32)
    x = ctr + seed * jnp.uint32(0x9E3779B9)

    # lowbias32 finaliser (Wellons): xor-shift-multiply mixer, pure VPU int ops.
    x = x ^ (x >> jnp.uint32(16))
    x = x * jnp.uint32(0x7FEB352D)
    x = x ^ (x >> jnp.uint32(15))
    x = x * jnp.uint32(0x846CA68B)
    x = x ^ (x >> jnp.uint32(16))

    # Top 24 bits -> uniform [0, 1).  (<= 2^24-1 so the int32 cast is safe.)
    bits24 = (x >> jnp.uint32(8)).astype(jnp.int32)
    out_ref[...] = bits24.astype(jnp.float32) * jnp.float32(1.0 / (1 << 24))


@jax.jit
def _ws_logits(seed: jax.Array) -> jax.Array:
    """One pallas_call producing the (32, 2) float32 logits directly."""
    return pl.pallas_call(
        _uniform_kernel,
        out_shape=jax.ShapeDtypeStruct((_ROWS, _COLS), jnp.float32),
        in_specs=[pl.BlockSpec(memory_space=pltpu.MemorySpace.SMEM)],
        out_specs=pl.BlockSpec(memory_space=pltpu.MemorySpace.VMEM),
    )(seed)


@jax.jit
def ws_model_forward(x: jax.Array, seed: jax.Array) -> jax.Array:
    """Pallas equivalent of WSModel.forward: ignores x, returns uniform (32, 2)."""
    del x  # faithfully unused, exactly like the PyTorch module
    return _ws_logits(seed)


if __name__ == "__main__":
    key = jax.random.PRNGKey(0)
    # Small NCHW input consistent with a conv-style model; it is ignored by forward.
    x = jax.random.normal(key, (2, 4, 16, 16), dtype=jnp.float32)
    seed = jnp.array([0], dtype=jnp.int32)  # vary per call for fresh randoms

    logits = ws_model_forward(x, seed)
    logits = jax.block_until_ready(logits)

    assert logits.shape == (_ROWS, _COLS), logits.shape
    assert logits.dtype == jnp.float32, logits.dtype
    assert bool(jnp.all((logits >= 0.0) & (logits < 1.0))), "values outside [0,1)"
    print("KERNEL_OK")
</pallas_src>

<mosaic_0001>
module attributes {stable_mosaic.version = 11 : i64} {
  func.func @_uniform_kernel(%arg0: memref<1xi32, #tpu.memory_space<smem>>, %arg1: memref<32x2xf32, #tpu.memory_space<vmem>>) attributes {dimension_semantics = [], scalar_prefetch = 0 : i64, scratch_operands = 0 : i64, tpu.core_type = #tpu.core_type<tc>} {
    %0 = tpu.iota {dimensions = array<i32: 0>} : vector<32x2xi32>
    %1 = tpu.iota {dimensions = array<i32: 1>} : vector<32x2xi32>
    %c2_i32 = arith.constant 2 : i32
    %2 = vector.broadcast %c2_i32 : i32 to vector<32x2xi32>
    %3 = arith.muli %0, %2 : vector<32x2xi32>
    %4 = arith.addi %3, %1 : vector<32x2xi32>
    %c0 = arith.constant 0 : index
    %5 = memref.load %arg0[%c0] : memref<1xi32, #tpu.memory_space<smem>>
    %c-1640531527_i32 = arith.constant -1640531527 : i32
    %6 = arith.muli %5, %c-1640531527_i32 : i32
    %7 = vector.broadcast %6 : i32 to vector<32x2xi32>
    %8 = arith.addi %4, %7 : vector<32x2xi32>
    %c16_i32 = arith.constant 16 : i32
    %9 = vector.broadcast %c16_i32 : i32 to vector<32x2xi32>
    %10 = arith.shrui %8, %9 : vector<32x2xi32>
    %11 = arith.xori %8, %10 : vector<32x2xi32>
    %c2146121005_i32 = arith.constant 2146121005 : i32
    %12 = vector.broadcast %c2146121005_i32 : i32 to vector<32x2xi32>
    %13 = arith.muli %11, %12 : vector<32x2xi32>
    %c15_i32 = arith.constant 15 : i32
    %14 = vector.broadcast %c15_i32 : i32 to vector<32x2xi32>
    %15 = arith.shrui %13, %14 : vector<32x2xi32>
    %16 = arith.xori %13, %15 : vector<32x2xi32>
    %c-2073254261_i32 = arith.constant -2073254261 : i32
    %17 = vector.broadcast %c-2073254261_i32 : i32 to vector<32x2xi32>
    %18 = arith.muli %16, %17 : vector<32x2xi32>
    %c16_i32_0 = arith.constant 16 : i32
    %19 = vector.broadcast %c16_i32_0 : i32 to vector<32x2xi32>
    %20 = arith.shrui %18, %19 : vector<32x2xi32>
    %21 = arith.xori %18, %20 : vector<32x2xi32>
    %c8_i32 = arith.constant 8 : i32
    %22 = vector.broadcast %c8_i32 : i32 to vector<32x2xi32>
    %23 = arith.shrui %21, %22 : vector<32x2xi32>
    %24 = arith.sitofp %23 : vector<32x2xi32> to vector<32x2xf32>
    %cst = arith.constant 5.96046448E-8 : f32
    %25 = vector.broadcast %cst : f32 to vector<32x2xf32>
    %26 = arith.mulf %24, %25 : vector<32x2xf32>
    %c0_1 = arith.constant 0 : index
    %c0_2 = arith.constant 0 : index
    %27 = vector.load %arg1[%c0_1, %c0_2] : memref<32x2xf32, #tpu.memory_space<vmem>>, vector<32x2xf32>
    tpu.vector_store %arg1[%c0_1, %c0_2], %26 {strides = array<i32>} : memref<32x2xf32, #tpu.memory_space<vmem>>, vector<32x2xf32>,
    return
  }
}

</mosaic_0001>

<bundles_post_ra>
// kernel: _ws_logits.1
= control target key start
LH: loop header
LB: loop body
LE: loop exit
PB: predicated region body
PF: predicated region fallthrough
CT: control target
= control target key end

     0   :  { %v9_v0 = vlaneseq  ;;  %vm75_vm0 = vcmask 15360   ;;  %s109_s0 = inlined_call_operand.<no memory space> [shape: s32[1], index: 0, kind: input, shape index: {}]   ;;  %s110_s1 = inlined_call_operand.vmem [shape: f32[32,2], index: 1, kind: output, shape index: {}]  }
   0x1   :  { %s25_s8 = smul.u32 2654435769, %s109_s0 }
   0x2   :  { %v10_v1 = vshrl.u32 %v9_v0, 7  ;;  %v15_v2 = vand.u32 127, %v9_v0 }
   0x3   :  { %v26_v7 = vstv %s25_s8 }
   0x4   :  { %v16_v3 = vmul.u32 2, %v10_v1  ;;  %v11_v4 = vadd.s32 8, %v10_v1  ;;  %v12_v5 = vadd.s32 16, %v10_v1  ;;  %v13_v6 = vadd.s32 24, %v10_v1 }
   0x6   :  { %v20_v8 = vadd.s32 %v16_v3, %v15_v2  ;;  %v17_v9 = vmul.u32 2, %v11_v4  ;;  %v18_v10 = vmul.u32 2, %v12_v5 }
   0x7   :  { %v19_v11 = vmul.u32 2, %v13_v6 }
   0x8   :  { %v27_v12 = vadd.s32 %v26_v7, %v20_v8  ;;  %v21_v13 = vadd.s32 %v17_v9, %v15_v2  ;;  %v22_v14 = vadd.s32 %v18_v10, %v15_v2 }
   0x9   :  { %v23_v15 = vadd.s32 %v19_v11, %v15_v2 }
   0xa   :  { %v31_v16 = vshrl.u32 %v27_v12, 16  ;;  %v28_v17 = vadd.s32 %v26_v7, %v21_v13  ;;  %v29_v18 = vadd.s32 %v26_v7, %v22_v14 }
   0xb   :  { %v30_v19 = vadd.s32 %v26_v7, %v23_v15 }
   0xc   :  { %v35_v20 = vxor.u32 %v31_v16, %v27_v12  ;;  %v32_v21 = vshrl.u32 %v28_v17, 16  ;;  %v33_v22 = vshrl.u32 %v29_v18, 16 }
   0xd   :  { %v34_v23 = vshrl.u32 %v30_v19, 16 }
   0xe   :  { %v39_v24 = vmul.u32 2146121005, %v35_v20  ;;  %v36_v25 = vxor.u32 %v32_v21, %v28_v17  ;;  %v37_v26 = vxor.u32 %v33_v22, %v29_v18 }
   0xf   :  { %v38_v27 = vxor.u32 %v34_v23, %v30_v19 }
  0x10   :  { %v43_v28 = vshrl.u32 %v39_v24, 15  ;;  %v40_v29 = vmul.u32 2146121005, %v36_v25  ;;  %v41_v30 = vmul.u32 2146121005, %v37_v26 }
  0x11   :  { %v42_v31 = vmul.u32 2146121005, %v38_v27 }
  0x12   :  { %v47_v32 = vxor.u32 %v43_v28, %v39_v24  ;;  %v44_v33 = vshrl.u32 %v40_v29, 15  ;;  %v45_v34 = vshrl.u32 %v41_v30, 15 }
  0x13   :  { %v46_v35 = vshrl.u32 %v42_v31, 15 }
  0x14   :  { %v51_v36 = vmul.u32 2221713035, %v47_v32  ;;  %v48_v37 = vxor.u32 %v44_v33, %v40_v29  ;;  %v49_v38 = vxor.u32 %v45_v34, %v41_v30 }
  0x15   :  { %v50_v39 = vxor.u32 %v46_v35, %v42_v31 }
  0x16   :  { %v55_v40 = vshrl.u32 %v51_v36, 16  ;;  %v52_v41 = vmul.u32 2221713035, %v48_v37  ;;  %v53_v42 = vmul.u32 2221713035, %v49_v38 }
  0x17   :  { %v54_v43 = vmul.u32 2221713035, %v50_v39 }
  0x18   :  { %v59_v44 = vxor.u32 %v55_v40, %v51_v36  ;;  %v56_v45 = vshrl.u32 %v52_v41, 16  ;;  %v57_v46 = vshrl.u32 %v53_v42, 16 }
  0x19   :  { %v58_v47 = vshrl.u32 %v54_v43, 16 }
  0x1a   :  { %v63_v48 = vshrl.u32 %v59_v44, 8  ;;  %v60_v49 = vxor.u32 %v56_v45, %v52_v41  ;;  %v61_v50 = vxor.u32 %v57_v46, %v53_v42 }
  0x1b   :  { %v62_v51 = vxor.u32 %v58_v47, %v54_v43 }
  0x1c   :  { %v67_v52 = vcvt.s32.f32 %v63_v48  ;;  %v64_v53 = vshrl.u32 %v60_v49, 8  ;;  %v65_v54 = vshrl.u32 %v61_v50, 8 }
  0x1d   :  { %v66_v55 = vshrl.u32 %v62_v51, 8 }
  0x1e   :  { %v71_v56 = vmul.f32 5.9604645e-08, %v67_v52  ;;  %v68_v57 = vcvt.s32.f32 %v64_v53  ;;  %v69_v58 = vcvt.s32.f32 %v65_v54 }
  0x1f   :  { %v70_v59 = vcvt.s32.f32 %v66_v55 }
  0x20   :  { %76 = vst.msk [vmem:[%s110_s1] sm:$0xff] %vm75_vm0, %v71_v56  ;;  %v72_v60 = vmul.f32 5.9604645e-08, %v68_v57  ;;  %v73_v61 = vmul.f32 5.9604645e-08, %v69_v58 }
  0x21   :  { %v74_v62 = vmul.f32 5.9604645e-08, %v70_v59 }
  0x22   :  { %77 = vst.msk [vmem:[%s110_s1 + $0x8] sm:$0xff] %vm75_vm0, %v72_v60  ;;  %78 = vst.msk [vmem:[%s110_s1 + $0x10] sm:$0xff] %vm75_vm0, %v73_v61 }
  0x23   :  { %79 = vst.msk [vmem:[%s110_s1 + $0x18] sm:$0xff] %vm75_vm0, %v74_v62 }

</bundles_post_ra>
